<compile_context>
chip_gen: v6e
topology: v6e:2x2x1
jax: 0.10.0
libtpu: 0.0.40
codegen_flags: <defaults>
</compile_context>

<pallas_src>
import functools

import jax
import jax.numpy as jnp
from jax.experimental import pallas as pl
from jax.experimental.pallas import tpu as pltpu

_NEG = -1e30  # effectively -inf for padded vocab lanes (exp underflows to 0.0)


def _round_up(x, m):
    return ((x + m - 1) // m) * m


def _bigram_kernel(idx_ref, table_ref, tgt_ref, logits_ref, nll_ref,
                   *, n_tokens, tn, v_pad, unroll):
    """One grid step handles TN tokens, processed in groups of 8 rows.

    idx_ref    : SMEM (N_pad,) int32      scalar prefetch, drives the row gather
    table_ref  : VMEM (V, 1, V_pad) f32   resident; lanes >= vocab pre-filled with -1e30
    tgt_ref    : VMEM (TN, 1) int32       targets (plain pipelined input)
    logits_ref : VMEM (TN, V_pad) f32     lane-dense output block
    nll_ref    : VMEM (TN, 1) f32         per-row NLL (padded rows -> 0)
    """
    t = pl.program_id(0)
    base = t * tn
    n_groups = tn // 8

    lane_ids = jax.lax.broadcasted_iota(jnp.int32, (8, v_pad), 1)
    row_ids = jax.lax.broadcasted_iota(jnp.int32, (8, 1), 0)

    def group_body(g, carry):
        off = pl.multiple_of(g * 8, 8)

        # Gather 8 table rows into registers and issue ONE dense, sublane-aligned
        # (8, V_pad) store — no per-row masked vst, no tile read-back.
        rows = [table_ref[idx_ref[base + off + j]] for j in range(8)]   # 8 x (1, V_pad)
        grp = jnp.concatenate(rows, axis=0)                             # (8, V_pad) f32
        logits_ref[pl.ds(off, 8), :] = grp

        # Cross-entropy epilogue on the in-register group.  Padded vocab lanes
        # hold -1e30 (host-side padding) so they vanish from the logsumexp.
        tgt = tgt_ref[pl.ds(off, 8), :]                                 # (8, 1) int32
        m = jnp.max(grp, axis=-1, keepdims=True)                        # (8, 1)
        lse = jnp.log(jnp.sum(jnp.exp(grp - m), axis=-1, keepdims=True)) + m
        picked = jnp.sum(jnp.where(lane_ids == tgt, grp, 0.0),
                         axis=-1, keepdims=True)                        # (8, 1)

        # Zero rows beyond the true token count so the host-side mean is exact.
        valid = (base + off + row_ids) < n_tokens
        nll_ref[pl.ds(off, 8), :] = jnp.where(valid, lse - picked, 0.0)
        return carry

    jax.lax.fori_loop(0, n_groups, group_body, 0, unroll=unroll)


def bigram_forward(idx, targets, table, *, tn=256):
    """idx, targets: (B, T) int32; table: (V, V) float32.
    Returns (logits (B, T, V) float32, loss scalar float32).
    Note: PyTorch returns the (B*T, V) view when targets are given; values are
    identical, only the reshape differs."""
    B, T = idx.shape
    V = table.shape[0]
    N = B * T

    v_pad = _round_up(V, 128)                       # lane-dense vocab dimension
    # Token tile: large to amortize per-grid-step overhead, multiple of 8, but
    # keep >= 2 tiles when N allows so the "parallel" grid axis can feed both
    # TensorCores on v7x.
    tn = max(8, min(_round_up(tn, 8), _round_up(pl.cdiv(N, 2), 8)))
    n_tiles = pl.cdiv(N, tn)
    n_pad = n_tiles * tn
    n_groups = tn // 8
    unroll = 4 if n_groups % 4 == 0 else 1

    # VMEM budget guard: table + logits tile + targets tile, double-buffered.
    vmem_est = 2 * (V * v_pad * 4 + tn * v_pad * 4 + 2 * tn * 4)
    assert vmem_est < 16 * 1024 * 1024, "tiles exceed conservative VMEM budget"
    # TODO(synk): for realistic vocab sizes keep the table in HBM
    # (memory_space=pl.ANY + manual DMA row gather) and set vmem_limit_bytes.

    # Host-side layout prep: flatten + pad tokens; pad vocab lanes with -1e30;
    # reshape the table to (V, 1, V_pad) so each row is one dynamically
    # indexable slab.
    idx_flat = jnp.zeros((n_pad,), jnp.int32).at[:N].set(
        idx.reshape(-1).astype(jnp.int32))
    tgt_flat = jnp.zeros((n_pad, 1), jnp.int32).at[:N, 0].set(
        targets.reshape(-1).astype(jnp.int32))
    table_p = jnp.pad(table.astype(jnp.float32), ((0, 0), (0, v_pad - V)),
                      constant_values=_NEG)
    table3 = table_p.reshape(V, 1, v_pad)

    kernel = functools.partial(_bigram_kernel, n_tokens=N, tn=tn,
                               v_pad=v_pad, unroll=unroll)

    cost = pl.CostEstimate(
        flops=8 * n_pad * v_pad,                       # CE epilogue elementwise work
        transcendentals=n_pad * v_pad + 2 * n_pad,     # exp + log
        bytes_accessed=(n_pad * v_pad * 4              # logits out
                        + n_pad * 4                    # nll out
                        + V * v_pad * 4                # table in
                        + 2 * n_pad * 4),              # idx / targets
    )

    logits_pad, nll = pl.pallas_call(
        kernel,
        out_shape=(jax.ShapeDtypeStruct((n_pad, v_pad), jnp.float32),
                   jax.ShapeDtypeStruct((n_pad, 1), jnp.float32)),
        grid_spec=pltpu.PrefetchScalarGridSpec(
            num_scalar_prefetch=1,                     # idx -> SMEM (drives gather)
            grid=(n_tiles,),
            in_specs=[pl.BlockSpec((V, 1, v_pad), lambda t, idx_r: (0, 0, 0)),  # table
                      pl.BlockSpec((tn, 1), lambda t, idx_r: (t, 0))],          # targets
            out_specs=(pl.BlockSpec((tn, v_pad), lambda t, idx_r: (t, 0)),
                       pl.BlockSpec((tn, 1), lambda t, idx_r: (t, 0))),
        ),
        compiler_params=pltpu.CompilerParams(
            dimension_semantics=("parallel",)),        # tiles independent (v7x megacore)
        cost_estimate=cost,
    )(idx_flat, table3, tgt_flat)

    logits = logits_pad[:N, :V].reshape(B, T, V)
    loss = jnp.sum(nll) / N                            # mean over the TRUE token count
    return logits, loss


if __name__ == "__main__":
    key = jax.random.PRNGKey(0)
    k_tab, k_idx, k_tgt = jax.random.split(key, 3)

    vocab_size = 65   # e.g. char-level vocab
    B, T = 2, 8

    # nn.Embedding default init: N(0, 1)
    table = jax.random.normal(k_tab, (vocab_size, vocab_size), dtype=jnp.float32)
    idx = jax.random.randint(k_idx, (B, T), 0, vocab_size, dtype=jnp.int32)
    targets = jax.random.randint(k_tgt, (B, T), 0, vocab_size, dtype=jnp.int32)

    logits, loss = bigram_forward(idx, targets, table)
    jax.block_until_ready((logits, loss))

    # reference check in plain JAX
    ref_logits = table[idx]                                   # (B, T, V)
    lflat = ref_logits.reshape(B * T, vocab_size)
    lse = jax.nn.logsumexp(lflat, axis=-1)
    ref_loss = jnp.mean(lse - lflat[jnp.arange(B * T), targets.reshape(-1)])

    assert logits.shape == (B, T, vocab_size)
    assert jnp.allclose(logits, ref_logits, atol=1e-5)
    assert jnp.allclose(loss, ref_loss, atol=1e-5)

    # TODO(synk): generate() (torch.multinomial sampling loop) is host-side
    # autoregressive control flow, not implemented as a kernel here.
    print("KERNEL_OK")
</pallas_src>

<mosaic_0001>
module attributes {stable_mosaic.version = 11 : i64} {
  func.func @_bigram_kernel(%arg0: i32, %arg1: memref<16xi32, #tpu.memory_space<smem>>, %arg2: memref<65x1x128xf32, #tpu.memory_space<vmem>>, %arg3: memref<8x1xi32, #tpu.memory_space<vmem>>, %arg4: memref<8x128xf32, #tpu.memory_space<vmem>>, %arg5: memref<8x1xf32, #tpu.memory_space<vmem>>) attributes {dimension_semantics = [#tpu.dimension_semantics<parallel>], iteration_bounds = array<i64: 2>, scalar_prefetch = 1 : i64, scratch_operands = 0 : i64, tpu.core_type = #tpu.core_type<tc>, window_params = [{pipeline_mode = #tpu.pipeline_mode<synchronous>, transform_indices = @transform_0, window_bounds = array<i64: 65, 1, 128>}, {transform_indices = @transform_1, window_bounds = array<i64: 8, 1>}, {transform_indices = @transform_2, window_bounds = array<i64: 8, 128>}, {transform_indices = @transform_3, window_bounds = array<i64: 8, 1>}]} {
    %c8_i32 = arith.constant 8 : i32
    %0 = arith.muli %arg0, %c8_i32 : i32
    %1 = tpu.iota {dimensions = array<i32: 1>} : vector<8x128xi32>
    %2 = tpu.iota {dimensions = array<i32: 0>} : vector<8x1xi32>
    %c0_i32 = arith.constant 0 : i32
    %c8_i32_0 = arith.constant 8 : i32
    %3 = arith.muli %c0_i32, %c8_i32_0 : i32
    %4 = tpu.assume_multiple %3, 8 : i32
    %5 = arith.addi %0, %4 : i32
    %c0_i32_1 = arith.constant 0 : i32
    %6 = arith.addi %5, %c0_i32_1 : i32
    %7 = arith.index_cast %6 : i32 to index
    %8 = memref.load %arg1[%7] : memref<16xi32, #tpu.memory_space<smem>>
    %9 = arith.index_cast %8 : i32 to index
    %c0 = arith.constant 0 : index
    %c0_2 = arith.constant 0 : index
    %10 = vector.load %arg2[%9, %c0, %c0_2] : memref<65x1x128xf32, #tpu.memory_space<vmem>>, vector<1x1x128xf32>
    %11 = vector.shape_cast %10 : vector<1x1x128xf32> to vector<1x128xf32>
    %12 = arith.addi %0, %4 : i32
    %c1_i32 = arith.constant 1 : i32
    %13 = arith.addi %12, %c1_i32 : i32
    %14 = arith.index_cast %13 : i32 to index
    %15 = memref.load %arg1[%14] : memref<16xi32, #tpu.memory_space<smem>>
    %16 = arith.index_cast %15 : i32 to index
    %c0_3 = arith.constant 0 : index
    %c0_4 = arith.constant 0 : index
    %17 = vector.load %arg2[%16, %c0_3, %c0_4] : memref<65x1x128xf32, #tpu.memory_space<vmem>>, vector<1x1x128xf32>
    %18 = vector.shape_cast %17 : vector<1x1x128xf32> to vector<1x128xf32>
    %19 = arith.addi %0, %4 : i32
    %c2_i32 = arith.constant 2 : i32
    %20 = arith.addi %19, %c2_i32 : i32
    %21 = arith.index_cast %20 : i32 to index
    %22 = memref.load %arg1[%21] : memref<16xi32, #tpu.memory_space<smem>>
    %23 = arith.index_cast %22 : i32 to index
    %c0_5 = arith.constant 0 : index
    %c0_6 = arith.constant 0 : index
    %24 = vector.load %arg2[%23, %c0_5, %c0_6] : memref<65x1x128xf32, #tpu.memory_space<vmem>>, vector<1x1x128xf32>
    %25 = vector.shape_cast %24 : vector<1x1x128xf32> to vector<1x128xf32>
    %26 = arith.addi %0, %4 : i32
    %c3_i32 = arith.constant 3 : i32
    %27 = arith.addi %26, %c3_i32 : i32
    %28 = arith.index_cast %27 : i32 to index
    %29 = memref.load %arg1[%28] : memref<16xi32, #tpu.memory_space<smem>>
    %30 = arith.index_cast %29 : i32 to index
    %c0_7 = arith.constant 0 : index
    %c0_8 = arith.constant 0 : index
    %31 = vector.load %arg2[%30, %c0_7, %c0_8] : memref<65x1x128xf32, #tpu.memory_space<vmem>>, vector<1x1x128xf32>
    %32 = vector.shape_cast %31 : vector<1x1x128xf32> to vector<1x128xf32>
    %33 = arith.addi %0, %4 : i32
    %c4_i32 = arith.constant 4 : i32
    %34 = arith.addi %33, %c4_i32 : i32
    %35 = arith.index_cast %34 : i32 to index
    %36 = memref.load %arg1[%35] : memref<16xi32, #tpu.memory_space<smem>>
    %37 = arith.index_cast %36 : i32 to index
    %c0_9 = arith.constant 0 : index
    %c0_10 = arith.constant 0 : index
    %38 = vector.load %arg2[%37, %c0_9, %c0_10] : memref<65x1x128xf32, #tpu.memory_space<vmem>>, vector<1x1x128xf32>
    %39 = vector.shape_cast %38 : vector<1x1x128xf32> to vector<1x128xf32>
    %40 = arith.addi %0, %4 : i32
    %c5_i32 = arith.constant 5 : i32
    %41 = arith.addi %40, %c5_i32 : i32
    %42 = arith.index_cast %41 : i32 to index
    %43 = memref.load %arg1[%42] : memref<16xi32, #tpu.memory_space<smem>>
    %44 = arith.index_cast %43 : i32 to index
    %c0_11 = arith.constant 0 : index
    %c0_12 = arith.constant 0 : index
    %45 = vector.load %arg2[%44, %c0_11, %c0_12] : memref<65x1x128xf32, #tpu.memory_space<vmem>>, vector<1x1x128xf32>
    %46 = vector.shape_cast %45 : vector<1x1x128xf32> to vector<1x128xf32>
    %47 = arith.addi %0, %4 : i32
    %c6_i32 = arith.constant 6 : i32
    %48 = arith.addi %47, %c6_i32 : i32
    %49 = arith.index_cast %48 : i32 to index
    %50 = memref.load %arg1[%49] : memref<16xi32, #tpu.memory_space<smem>>
    %51 = arith.index_cast %50 : i32 to index
    %c0_13 = arith.constant 0 : index
    %c0_14 = arith.constant 0 : index
    %52 = vector.load %arg2[%51, %c0_13, %c0_14] : memref<65x1x128xf32, #tpu.memory_space<vmem>>, vector<1x1x128xf32>
    %53 = vector.shape_cast %52 : vector<1x1x128xf32> to vector<1x128xf32>
    %54 = arith.addi %0, %4 : i32
    %c7_i32 = arith.constant 7 : i32
    %55 = arith.addi %54, %c7_i32 : i32
    %56 = arith.index_cast %55 : i32 to index
    %57 = memref.load %arg1[%56] : memref<16xi32, #tpu.memory_space<smem>>
    %58 = arith.index_cast %57 : i32 to index
    %c0_15 = arith.constant 0 : index
    %c0_16 = arith.constant 0 : index
    %59 = vector.load %arg2[%58, %c0_15, %c0_16] : memref<65x1x128xf32, #tpu.memory_space<vmem>>, vector<1x1x128xf32>
    %60 = vector.shape_cast %59 : vector<1x1x128xf32> to vector<1x128xf32>
    %61 = tpu.concatenate %11, %18, %25, %32, %39, %46, %53, %60 in 0 : vector<1x128xf32>, vector<1x128xf32>, vector<1x128xf32>, vector<1x128xf32>, vector<1x128xf32>, vector<1x128xf32>, vector<1x128xf32>, vector<1x128xf32> -> vector<8x128xf32>
    %62 = arith.index_cast %4 : i32 to index
    %c0_17 = arith.constant 0 : index
    %63 = vector.load %arg4[%62, %c0_17] : memref<8x128xf32, #tpu.memory_space<vmem>>, vector<8x128xf32>
    tpu.vector_store %arg4[%62, %c0_17], %61 {strides = array<i32>} : memref<8x128xf32, #tpu.memory_space<vmem>>, vector<8x128xf32>,
    %64 = arith.index_cast %4 : i32 to index
    %c0_18 = arith.constant 0 : index
    %65 = vector.load %arg3[%64, %c0_18] : memref<8x1xi32, #tpu.memory_space<vmem>>, vector<8x1xi32>
    %cst = arith.constant dense<0xFF800000> : vector<8xf32>
    %66 = vector.multi_reduction <maximumf>, %61, %cst [1] : vector<8x128xf32> to vector<8xf32>
    %67 = vector.shape_cast %66 : vector<8xf32> to vector<8x1xf32>
    %68 = vector.broadcast %67 : vector<8x1xf32> to vector<8x128xf32>
    %69 = arith.subf %61, %68 : vector<8x128xf32>
    %70 = math.exp %69 : vector<8x128xf32>
    %cst_19 = arith.constant dense<0.000000e+00> : vector<8xf32>
    %71 = vector.multi_reduction <add>, %70, %cst_19 [1] : vector<8x128xf32> to vector<8xf32>
    %72 = vector.shape_cast %71 : vector<8xf32> to vector<8x1xf32>
    %73 = math.log %72 : vector<8x1xf32>
    %74 = arith.addf %73, %67 : vector<8x1xf32>
    %75 = vector.broadcast %65 : vector<8x1xi32> to vector<8x128xi32>
    %76 = arith.cmpi eq, %1, %75 : vector<8x128xi32>
    %cst_20 = arith.constant 0.000000e+00 : f32
    %77 = vector.broadcast %cst_20 : f32 to vector<8x128xf32>
    %78 = arith.select %76, %61, %77 : vector<8x128xi1>, vector<8x128xf32>
    %cst_21 = arith.constant dense<0.000000e+00> : vector<8xf32>
    %79 = vector.multi_reduction <add>, %78, %cst_21 [1] : vector<8x128xf32> to vector<8xf32>
    %80 = vector.shape_cast %79 : vector<8xf32> to vector<8x1xf32>
    %81 = arith.addi %0, %4 : i32
    %82 = vector.broadcast %81 : i32 to vector<8x1xi32>
    %83 = arith.addi %82, %2 : vector<8x1xi32>
    %c16_i32 = arith.constant 16 : i32
    %84 = vector.broadcast %c16_i32 : i32 to vector<8x1xi32>
    %85 = arith.cmpi slt, %83, %84 : vector<8x1xi32>
    %86 = arith.subf %74, %80 : vector<8x1xf32>
    %cst_22 = arith.constant 0.000000e+00 : f32
    %87 = vector.broadcast %cst_22 : f32 to vector<8x1xf32>
    %88 = arith.select %85, %86, %87 : vector<8x1xi1>, vector<8x1xf32>
    %89 = arith.index_cast %4 : i32 to index
    %c0_23 = arith.constant 0 : index
    %90 = vector.load %arg5[%89, %c0_23] : memref<8x1xf32, #tpu.memory_space<vmem>>, vector<8x1xf32>
    tpu.vector_store %arg5[%89, %c0_23], %88 {strides = array<i32>} : memref<8x1xf32, #tpu.memory_space<vmem>>, vector<8x1xf32>,
    %c1_i32_24 = arith.constant 1 : i32
    return
  }
  func.func @transform_0(%arg0: i32, %arg1: memref<16xi32, #tpu.memory_space<smem>>) -> (i32, i32, i32) {
    %c0_i32 = arith.constant 0 : i32
    %c0_i32_0 = arith.constant 0 : i32
    %c0_i32_1 = arith.constant 0 : i32
    %c0_i32_2 = arith.constant 0 : i32
    return %c0_i32, %c0_i32_0, %c0_i32_1 : i32, i32, i32
  }
  func.func @transform_1(%arg0: i32, %arg1: memref<16xi32, #tpu.memory_space<smem>>) -> (i32, i32) {
    %c0_i32 = arith.constant 0 : i32
    %c0_i32_0 = arith.constant 0 : i32
    return %arg0, %c0_i32 : i32, i32
  }
  func.func @transform_2(%arg0: i32, %arg1: memref<16xi32, #tpu.memory_space<smem>>) -> (i32, i32) {
    %c0_i32 = arith.constant 0 : i32
    %c0_i32_0 = arith.constant 0 : i32
    return %arg0, %c0_i32 : i32, i32
  }
  func.func @transform_3(%arg0: i32, %arg1: memref<16xi32, #tpu.memory_space<smem>>) -> (i32, i32) {
    %c0_i32 = arith.constant 0 : i32
    %c0_i32_0 = arith.constant 0 : i32
    return %arg0, %c0_i32 : i32, i32
  }
}

</mosaic_0001>

<bundles_post_ra>
// kernel: tpu_custom_call.1
= control target key start
LH: loop header
LB: loop body
LE: loop exit
PB: predicated region body
PF: predicated region fallthrough
CT: control target
= control target key end

     0   :  { %s797_s0 = inlined_call_operand.vmem [shape: s32[16], index: 0, kind: input, shape index: {}]   ;;  %s798_s1 = inlined_call_operand.hbm [shape: f32[65,1,128], index: 1, kind: input, shape index: {}]   ;;  %s799_s2 = inlined_call_operand.vmem [shape: s32[16,1], index: 2, kind: input, shape index: {}]   ;;  %s800_s3 = inlined_call_operand.hbm [shape: f32[16,128], index: 3, kind: output, shape index: {0}]   ;;  %s801_s4 = inlined_call_operand.vmem [shape: f32[16,1], index: 4, kind: output, shape index: {1}]  }
   0x1   :  { %s10_s17 = sshll.u32 %s797_s0, 4  ;;  %s11_s17 = int_to_ptr.vmem [resolvable:$true] %s10_s17 }
   0x2   :  { %s522_s18 = scalar_lea.vmem %s11_s17, 16  ;;  %p527_p1 = scmp.lt.s32.totalorder %s11_s17, %s11_s17 }
   0x3   :  { %p523_p0 = scmp.ne.s32.totalorder %s11_s17, %s522_s18  ;;  %p528_p2 = scmp.lt.s32.totalorder %s522_s18, %s522_s18 }
   0x5   :  { %p529_p3 = por %p528_p2, %p527_p1 }
   0x7   :  { %p530_p4 = pnand %p529_p3, %p523_p0 }
   0x9   :  { %533 = shalt.err (!%p530_p4)  }
   0xa   :  { %s628_s19 = smov [#allocation3]  }
   0xb   :  { %13 = dma.vmem_to_smem %s11_s17, 16, %s628_s19, [#allocation2] }
   0xc   :  { %602 = dma.done.wait [#allocation2], 16 }
   0xd   :  { %603 = vsyncadd [#allocation2], 4294967280 }
   0xe   :  { %15 = sfence }
   0xf   :  { %16 = vsyncpa [#allocation5], 0 }
  0x10   :  { %17 = vsyncpa [#allocation6], 0 }
  0x11   :  { %19 = vsyncpa [#allocation6 + $0x1], 0  ;;  %s662_s20 = smov 0   ;;  %s664_s21 = smov 0  }
  0x12   :  { %s666_s0 = smov 0   ;;  %s668_s22 = smov 0  }
  0x13 LB: > { %s683_s23 = sadd.s32 4294967295, %s626_s22   ;;  %s442_s24 = sadd.s32 4294967294, %s626_s22   ;;  %s626_s22 = sphi %s668_s22, %s809_s22   ;;  %s622_s0 = sphi %s666_s0, %s808_s0   ;;  %s618_s21 = sphi %s664_s21, %s807_s21   ;;  %s614_s20 = sphi %s662_s20, %s806_s20  }
  0x14   : > { %s687_s25 = sadd.s32 1, %s626_s22   ;;  %s79_s26 = sadd.s32 1, %s622_s0 }
  0x15   : > { %s76_s27 = ssub.s32 %s626_s22, %s687_s25  ;;  %p89_p5 = scmp.ne.s32.totalorder %s622_s0, %s618_s21 }
  0x16   : > { %p77_p6 = scmp.eq.s32.totalorder %s76_s27, 0  ;;  %p90_p7 = scmp.eq.s32.totalorder %s683_s23, 1 }
  0x17   : > { %p95_p8 = scmp.ne.s32.totalorder %s618_s21, %s614_s20  ;;  %p96_p9 = scmp.eq.s32.totalorder %s442_s24, 1 }
  0x18   : > { %s698_s28 = scalar_select %p77_p6, %s622_s0, %s79_s26  }
  0x19   : > { %p700_p10 = por %p90_p7, %p89_p5  ;;  %p704_p11 = por %p96_p9, %p95_p8 }
  0x1a   : > { %p443_p12 = scmp.ge.s32.totalorder %s626_s22, 1  ;;  %p129_p13 = scmp.lt.s32.totalorder %s626_s22, 3 }
  0x1b   : > { %p477_p0 = scmp.eq.s32.totalorder %s683_s23, 0  ;;  %s629_s6 = smov [#allocation4]  }
  0x1c   : > { %p711_p1 = pnand %p443_p12, %p129_p13  ;;  %s141_s7 = sshll.u32 %s629_s6, 4  ;;  %s142_s7 = int_to_ptr.vmem [resolvable:$true] %s141_s7 }
  0x1d   : > { %s545_s9 = scalar_lea.vmem %s142_s7, 1040  ;;  %s552_s10 = scalar_lea.vmem %s142_s7, 1056 }
  0x1e   : > { %p469_p2 = pneg %p711_p1  ;;  %p546_p5 = scmp.ne.s32.totalorder %s142_s7, %s545_s9 }
  0x1f   : > { %p553_p8 = scmp.lt.s32.totalorder %s142_s7, %s142_s7  ;;  %p554_p9 = scmp.lt.s32.totalorder %s552_s10, %s545_s9 }
  0x20   : > { %p719_p3 = pnand %p477_p0, %p469_p2 }
  0x21   : > { %p555_p12 = por %p554_p9, %p553_p8 }
  0x22   : > { %p536_p4 = pneg %p719_p3 }
  0x24   : > { %p548_p6 = pnand %p546_p5, %p536_p4 }
  0x26   : > { %p549_p7 = pneg %p548_p6 }
  0x28   : > { %p556_p13 = pnand %p555_p12, %p549_p7 }
  0x2a   : > { %559 = shalt.err (!%p556_p13)
}
  0x2b   : > { %s630_s11 = smov 16   ;;  %s631_s12 = smov 1  }
  0x2c   : > { %472 = dma.hbm_to_vmem [thread:$0]  (!%p719_p3), %s798_s1, 1040, %s142_s7, [#allocation5], %s630_s11, %s630_s11, %s631_s12  }
  0x2d   : > { %164 = sbr.rel (%p711_p1) target bundleno = 385 (0x181), region = 28 }
  0x32   : > { %605 = dma.done.wait (%p477_p0), [#allocation5], 1040  }
  0x33   : > { %607 = vsyncadd (%p477_p0), [#allocation5], 4294966256  ;;  %s737_s15 = sshll.u32 %s683_s23, 3  ;;  %v632_v0 = vmov 0   ;;  %vm278_vm0 = vcmask 1040384   ;;  %vm280_vm1 = vcmask 1041408   ;;  %v200_v20 = vlaneseq }
  0x34   : > { %s205_s16 = sld [smem:[#allocation3 + %s737_s15]]  ;;  %s208_s17 = sadd.s32 1, %s737_s15  ;;  %517 = vset.pattern.permute.xlu0 %v632_v0  ;;  %vm282_vm2 = vcmask 1042432   ;;  %vm284_vm3 = vcmask 1043456   ;;  %vm286_vm4 = vcmask 1044480   ;;  %vm288_vm5 = vcmask 1045504  }
  0x35   : > { %s209_s18 = sld [smem:[#allocation3 + %s208_s17]]  ;;  %s212_s19 = sadd.s32 2, %s737_s15  ;;  %vm290_vm6 = vcmask 1046528   ;;  %v201_v21 = vand.u32 127, %v200_v20 }
  0x36   : > { %s213_s24 = sld [smem:[#allocation3 + %s212_s19]]  ;;  %s216_s26 = sadd.s32 3, %s737_s15 }
  0x37   : > { %s217_s27 = sld [smem:[#allocation3 + %s216_s26]]  ;;  %s220_s5 = sadd.s32 4, %s737_s15 }
  0x38   : > { %s221_s6 = sld [smem:[#allocation3 + %s220_s5]]  ;;  %s224_s7 = sadd.s32 5, %s737_s15 }
  0x39   : > { %s225_s8 = sld [smem:[#allocation3 + %s224_s7]]  ;;  %s228_s9 = sadd.s32 6, %s737_s15 }
  0x3a   : > { %s229_s10 = sld [smem:[#allocation3 + %s228_s9]]  ;;  %s206_s11 = scalar_lea.vmem [#allocation4], %s205_s16 }
  0x3b   : > { %v207_v1 = vld [vmem:[%s206_s11] sm:$0x1]  ;;  %s232_s12 = sadd.s32 7, %s737_s15  ;;  %s210_s13 = scalar_lea.vmem [#allocation4], %s209_s18 }
  0x3c   : > { %v452_v2 = vld [vmem:[%s210_s13] ss:$0 sm:$0xff]  ;;  %s233_s14 = sld [smem:[#allocation3 + %s232_s12]]  ;;  %s214_s17 = scalar_lea.vmem [#allocation4], %s213_s24 }
  0x3d   : > { %v453_v3 = vld [vmem:[%s214_s17] ss:$0 sm:$0xff]  ;;  %v279_v4 = vsel %vm278_vm0, %v207_v1, %v452_v2  ;;  %s218_s19 = scalar_lea.vmem [#allocation4], %s217_s27  ;;  %p191_p0 = scmp.lt.s32.totalorder %s683_s23, 1 }
  0x3e   : > { %v454_v5 = vld [vmem:[%s218_s19] ss:$0 sm:$0xff]  ;;  %v281_v6 = vsel %vm280_vm1, %v279_v4, %v453_v3  ;;  %s222_s26 = scalar_lea.vmem [#allocation4], %s221_s6  ;;  %s182_s9 = sand.u32 1, %s618_s21  }
  0x3f   : > { %v455_v7 = vld [vmem:[%s222_s26] ss:$0 sm:$0xff]  ;;  %v283_v8 = vsel %vm282_vm2, %v281_v6, %v454_v5  ;;  %s226_s16 = scalar_lea.vmem [#allocation4], %s225_s8  ;;  %s460_s12 = sshll.u32 %s683_s23, 7 }
  0x40   : > { %v456_v9 = vld [vmem:[%s226_s16] ss:$0 sm:$0xff]  ;;  %v285_v10 = vsel %vm284_vm3, %v283_v8, %v455_v7  ;;  %s230_s18 = scalar_lea.vmem [#allocation4], %s229_s10  ;;  %s448_s10 = sshll.u32 %s182_s9, 3 }
  0x41   : > { %v457_v11 = vld [vmem:[%s230_s18] ss:$0 sm:$0xff]  ;;  %v287_v12 = vsel %vm286_vm4, %v285_v10, %v456_v9  ;;  %s749_s27 = scalar_select %p191_p0, %s683_s23, 1 }
  0x42   : > { %v289_v13 = vsel %vm288_vm5, %v287_v12, %v457_v11  ;;  %s234_s24 = scalar_lea.vmem [#allocation4], %s233_s14  ;;  %s184_s11 = scalar_lea.vmem [#allocation7], %s448_s10 }
  0x43   : > { %v458_v14 = vld [vmem:[%s234_s24] ss:$0 sm:$0xff]  ;;  %s449_s5 = sshll.u32 %s749_s27, 3  ;;  %s336_s13 = sshll.u32 %s184_s11, 4  ;;  %s337_s13 = int_to_ptr.vmem [resolvable:$true] %s336_s13 }
  0x44   : > { %v291_v15 = vsel %vm290_vm6, %v289_v13, %v458_v14  ;;  %s194_s8 = scalar_lea.vmem %s799_s2, %s449_s5  ;;  %s334_s19 = scalar_lea.hbm %s800_s3, %s460_s12 }
  0x45   : > { %294 = vmax.xlane.f32.xlu0 %v291_v15  ;;  %v293_v16 = vld [vmem:[%s194_s8] sm:$0xff]  ;;  %292 = vst [vmem:[%s184_s11] sm:$0xff] %v291_v15  ;;  %s319_s26 = scalar_lea.sflag [#allocation6], %s182_s9  ;;  %s560_s16 = scalar_lea.vmem %s337_s13, 128 }
  0x46   : > { %p561_p1 = scmp.ne.s32.totalorder %s337_s13, %s560_s16  ;;  %s633_s18 = smov [#allocation7]  }
  0x47   : > { %s564_s24 = sshll.u32 %s633_s18, 4  ;;  %s565_s24 = int_to_ptr.vmem [resolvable:$false] %s564_s24 }
  0x48   : > { %p562_p2 = pnand %p561_p1, %p700_p10  ;;  %s566_s6 = scalar_lea.vmem %s565_s24, 256 }
  0x49   : > { %p567_p4 = scmp.lt.s32.totalorder %s337_s13, %s565_s24  ;;  %p568_p5 = scmp.lt.s32.totalorder %s566_s6, %s560_s16 }
  0x4a   : > { %p563_p3 = pneg %p562_p2 }
  0x4b   : > { %p569_p6 = por %p568_p5, %p567_p4 }
  0x4d   : > { %p570_p7 = pnand %p569_p6, %p563_p3 }
  0x5b   : > { %305 = vperm.xlu0 %517, %v293_v16  }
  0xce   : > { %v295_v17 = vpop.xlane.xlu0 %294 }
  0xcf   : > { %v296_v18 = vsub.f32 %v291_v15, %v295_v17 }
  0xd1   : > { %v297_v19 = vmul.f32 1.442695, %v296_v18 }
  0xd3   : > { %518 = vpow2.f32 %v297_v19 }
  0xd6   : > { %v306_v22 = vpop.permute.xlu0 %305 }
  0xd7   : > { %vm307_vm7 = vcmp.eq.s32.totalorder %v201_v21, %v306_v22 }
  0xd8   : > { %v308_v24 = vsel %vm307_vm7, %v291_v15, 0.0 }
  0xe0   : > { %v519_v23 = vpop.eup %518 }
  0xe1   : > { %299 = vadd.xlane.f32.xlu1 %v519_v23 }
  0xe5   : > { %309 = vadd.xlane.f32.xlu1 %v308_v24 }
  0xe6   : > { %573 = shalt.err (!%p570_p7)
}
  0xe7   : > { %s574_s23 = scalar_lea.hbm %s334_s19, 128  ;;  %s578_s9 = scalar_lea.hbm %s800_s3, 256 }
  0xe8   : > { %p575_p8 = scmp.ne.s32.totalorder %s334_s19, %s574_s23  ;;  %p579_p13 = scmp.lt.s32.totalorder %s334_s19, %s800_s3 }
  0xe9   : > { %p580_p0 = scmp.lt.s32.totalorder %s578_s9, %s574_s23 }
  0xea   : > { %p576_p9 = pnand %p575_p8, %p700_p10 }
  0xeb   : > { %p581_p1 = por %p580_p0, %p579_p13 }
  0xec   : > { %p577_p12 = pneg %p576_p9 }
  0xee   : > { %p582_p2 = pnand %p581_p1, %p577_p12 }
  0xf0   : > { %585 = shalt.err (!%p582_p2)
}
  0xf1   : > { %467 = dma.vmem_to_hbm [thread:$0]  (%p700_p10), %s337_s13, 128, %s334_s19, %s319_s26   ;;  %v203_v26 = vshrl.u32 %v200_v20, 7  ;;  %v311_v27 = vstv %s737_s15  ;;  %vm316_vm9 = vcmask 7168  }
  0xf2   : > { %s198_s17 = scalar_lea.vmem %s801_s4, %s449_s5 }
  0xf3   : > { %v312_v29 = vadd.s32 %v311_v27, %v203_v26 }
  0xf5   : > { %vm313_vm8 = vcmp.lt.s32.totalorder %v312_v29, 16 }
 0x16a   : > { %v300_v25 = vpop.xlane.xlu1 %299 }
 0x16b   : > { %520 = vlog2.f32 %v300_v25 }
 0x16e   : > { %v310_v31 = vpop.xlane.xlu1 %309 }
 0x178   : > { %v521_v28 = vpop.eup %520 }
 0x179   : > { %v302_v30 = vmul.f32 0.6931472, %v521_v28 }
 0x17b   : > { %v303_v32 = vadd.f32 %v302_v30, %v295_v17 }
 0x17d   : > { %v314_v33 = vsub.f32 %v303_v32, %v310_v31 }
 0x17f   : > { %v315_v34 = vsel %vm313_vm8, %v314_v33, 0.0 }
 0x180   : > { %317 = vst.msk [vmem:[%s198_s17] sm:$0xff] %vm316_vm9, %v315_v34 }
 0x181 PF: > { %p479_p10 = scmp.ge.s32.totalorder %s626_s22, 2  ;;  %s351_s29 = sand.u32 1, %s614_s20  }
 0x182   : > { %s352_s15 = scalar_lea.sflag [#allocation6], %s351_s29 }
 0x183   : > { %p474_p3 = pnand %p479_p10, %p704_p11 }
 0x185   : > { %p475_p4 = pneg %p474_p3 }
 0x187   : > { %609 = dma.done.wait (%p475_p4), %s352_s15, 128  }
 0x188   : > { %611 = vsyncadd (%p475_p4), %s352_s15, 4294967168  ;;  %p22_p5 = scmp.ge.s32.totalorder %s687_s25, 4   ;;  %s806_s20 = smov %s618_s21 }
 0x189   : > { %s807_s21 = smov %s622_s0  ;;  %s808_s0 = smov %s698_s28 }
 0x18a   : > { %s809_s22 = smov %s687_s25  ;;  %24 = sbr.rel (!%p22_p5) target bundleno = 19 (0x13), region = 88 }
 0x18f   :  { %364 = vsyncpa [#allocation5], 1 }
 0x190   :  { %366 = vsyncpa [#allocation5 + $0x1], 1 }
 0x191   :  { %367 = vsyncpa [#allocation6], 1 }
 0x192   :  { %369 = vsyncpa [#allocation6 + $0x1], 1 }

</bundles_post_ra>
